<compile_context>
chip_gen: v7x
topology: tpu7x:2x2x1
jax: 0.10.0
libtpu: 0.0.40
codegen_flags: <defaults>
</compile_context>

<pallas_src>
import jax
import jax.numpy as jnp
import numpy as np
from jax.experimental import pallas as pl
from jax.experimental.pallas import tpu as pltpu

LN_EPS = 1e-5  # PyTorch nn.LayerNorm default eps

PARAM_ORDER = ("wqkv", "bqkv", "wo", "bo", "wfc", "bfc", "wpr", "bpr")


def _layernorm(v, w, b):
    # Full LayerNorm (fp32) — used by the pure-JAX reference only.
    mu = jnp.mean(v, axis=-1, keepdims=True)
    var = jnp.mean((v - mu) ** 2, axis=-1, keepdims=True)
    return (v - mu) * jax.lax.rsqrt(var + LN_EPS) * w + b


def _ln_normalize(v):
    # LayerNorm WITHOUT the affine part (gamma/beta folded into the following
    # matmul weights/bias at parameter-prep time). Always fp32.
    mu = jnp.mean(v, axis=-1, keepdims=True)
    var = jnp.mean((v - mu) ** 2, axis=-1, keepdims=True)
    return (v - mu) * jax.lax.rsqrt(var + LN_EPS)


def make_block_kernel(n_head):
    """One ResidualAttentionBlock per grid step, grid = (B//bt, L)."""

    def kernel(x_ref, wqkv, bqkv, wo, bo, wfc, bfc, wpr, bpr, y_ref):
        # Output block index is constant along the layer axis (last grid axis),
        # so y_ref stays resident in VMEM and carries the residual stream.
        @pl.when(pl.program_id(1) == 0)
        def _():
            y_ref[...] = x_ref[...]

        bt, S, D = y_ref.shape
        hd = D // n_head
        bf16 = jnp.bfloat16

        x = y_ref[...].reshape(bt * S, D)          # fp32 residual stream

        # ---- x = x + out_proj(MHA(ln_1(x))) ----
        # ln_1 gamma/beta and 1/sqrt(hd) are folded into wqkv / bqkv.
        h = _ln_normalize(x)
        qkv = jnp.dot(h.astype(bf16), wqkv[0],
                      preferred_element_type=jnp.float32) + bqkv[0]   # (bt*S, 3D) fp32
        q = qkv[:, :D]
        k = qkv[:, D:2 * D]
        v = qkv[:, 2 * D:]

        # Head-batched attention: gather (bt*H, S, hd) slabs (static slices),
        # then ONE batched score matmul + ONE softmax + ONE batched PV matmul.
        q_heads, k_heads, v_heads = [], [], []
        for bi in range(bt):
            r0 = bi * S
            for hi in range(n_head):
                c0 = hi * hd
                q_heads.append(q[r0:r0 + S, c0:c0 + hd])
                k_heads.append(k[r0:r0 + S, c0:c0 + hd])
                v_heads.append(v[r0:r0 + S, c0:c0 + hd])
        qh = jnp.stack(q_heads, axis=0).astype(bf16)    # (bt*H, S, hd)
        kh = jnp.stack(k_heads, axis=0).astype(bf16)
        vh = jnp.stack(v_heads, axis=0).astype(bf16)

        sc = jnp.einsum('bqd,bkd->bqk', qh, kh,
                        preferred_element_type=jnp.float32)           # (bt*H, S, S)
        sc = sc - jnp.max(sc, axis=-1, keepdims=True)
        e = jnp.exp(sc)
        p = e * pl.reciprocal(jnp.sum(e, axis=-1, keepdims=True), approx=True)
        ao3 = jnp.einsum('bqk,bkd->bqd', p.astype(bf16), vh,
                         preferred_element_type=jnp.float32)          # (bt*H, S, hd)

        rows = [jnp.concatenate([ao3[bi * n_head + hi] for hi in range(n_head)],
                                axis=-1) for bi in range(bt)]
        ao = rows[0] if bt == 1 else jnp.concatenate(rows, axis=0)    # (bt*S, D)

        attn = jnp.dot(ao.astype(bf16), wo[0],
                       preferred_element_type=jnp.float32) + bo[0]
        x = x + attn

        # ---- x = x + c_proj(QuickGELU(c_fc(ln_2(x)))) ----
        # ln_2 gamma/beta folded into wfc / bfc.
        h2 = _ln_normalize(x)
        u = jnp.dot(h2.astype(bf16), wfc[0],
                    preferred_element_type=jnp.float32) + bfc[0]
        g = u * jax.nn.sigmoid(1.702 * u)            # QuickGELU (fp32)
        m = jnp.dot(g.astype(bf16), wpr[0],
                    preferred_element_type=jnp.float32) + bpr[0]
        x = x + m

        y_ref[...] = x.reshape(bt, S, D)

    return kernel


def _pick_batch_tile(B, max_tile=8):
    """Largest divisor of B (<= max_tile) that still leaves >= 2 parallel grid
    blocks when possible (keeps both v7x TensorCores busy)."""
    candidates = [bt for bt in range(1, min(B, max_tile) + 1) if B % bt == 0]
    for bt in sorted(candidates, reverse=True):
        if B // bt >= 2:
            return bt
    return candidates[-1] if candidates else 1


def transformer_forward(x_sbd, kparams, n_head):
    """x_sbd: (S, B, D) like the PyTorch module. Returns (S, B, D) fp32."""
    x_bsd = jnp.transpose(x_sbd, (1, 0, 2)).astype(jnp.float32)
    B, S, D = x_bsd.shape
    L = kparams["wqkv"].shape[0]
    bt = _pick_batch_tile(B)
    weights = [kparams[k] for k in PARAM_ORDER]

    in_specs = [pl.BlockSpec((bt, S, D), lambda b, l: (b, 0, 0))]
    for w in weights:
        blk = (1,) + w.shape[1:]
        in_specs.append(pl.BlockSpec(blk, lambda b, l: (l, 0, 0)))

    # VMEM budget: double-buffered blocks + fp32 in-kernel intermediates.
    blk_bytes = 2 * bt * S * D * 4                     # x block + resident y block
    for w in weights:
        blk_bytes += int(np.prod(w.shape[1:])) * w.dtype.itemsize
    inter_bytes = (bt * S * (3 * D + 4 * D + 2 * D)
                   + 2 * bt * n_head * S * S) * 4
    vmem_limit = int(min(96 << 20,                     # stay v5e/v6e-safe; v7x phys = 64 MiB
                         max(32 << 20, 2 * blk_bytes + 2 * inter_bytes + (4 << 20))))

    y = pl.pallas_call(
        make_block_kernel(n_head),
        out_shape=jax.ShapeDtypeStruct((B, S, D), jnp.float32),
        grid=(B // bt, L),
        in_specs=in_specs,
        out_specs=pl.BlockSpec((bt, S, D), lambda b, l: (b, 0, 0)),
        compiler_params=pltpu.CompilerParams(
            dimension_semantics=("parallel", "arbitrary"),
            vmem_limit_bytes=vmem_limit),
    )(x_bsd, *weights)
    return jnp.transpose(y, (1, 0, 2))


def init_torch_params(key, layers, width):
    """Deterministic synthetic parameters in PyTorch layout ((out, in) weights)."""
    D = width
    ks = iter(jax.random.split(key, layers * 12))

    def nrm(shape, s=0.02):
        return (s * jax.random.normal(next(ks), shape)).astype(jnp.float32)

    layers_p = []
    for _ in range(layers):
        layers_p.append(dict(
            ln1_w=jnp.ones((D,), jnp.float32) + nrm((D,)),
            ln1_b=nrm((D,)),
            in_proj_w=nrm((3 * D, D)),        # nn.MultiheadAttention in_proj_weight
            in_proj_b=nrm((3 * D,)),
            out_proj_w=nrm((D, D)),
            out_proj_b=nrm((D,)),
            ln2_w=jnp.ones((D,), jnp.float32) + nrm((D,)),
            ln2_b=nrm((D,)),
            c_fc_w=nrm((4 * D, D)),
            c_fc_b=nrm((4 * D,)),
            c_proj_w=nrm((D, 4 * D)),
            c_proj_b=nrm((D,)),
        ))
    return layers_p


def prep_kernel_params(layers_p, n_head):
    """Kernel-ready params: stacked over layers, weights transposed to (in, out)
    and cast to bf16. Folds (a) 1/sqrt(head_dim) into the q columns of QKV and
    (b) the ln_1 / ln_2 affine (gamma, beta) into the QKV / c_fc weights+biases:
        (x_norm*g + b) @ W  ==  x_norm @ (diag(g) W) + (b @ W).
    Biases stay fp32 (added to the fp32 accumulator)."""
    D = layers_p[0]["ln1_w"].shape[0]
    hd = D // n_head
    scale = 1.0 / float(hd) ** 0.5
    qscale = jnp.concatenate([jnp.full((D,), scale, jnp.float32),
                              jnp.ones((2 * D,), jnp.float32)])
    cols = {k: [] for k in PARAM_ORDER}
    for p in layers_p:
        wq = p["in_proj_w"].T.astype(jnp.float32) * qscale[None, :]          # (D, 3D)
        cols["wqkv"].append((p["ln1_w"][:, None] * wq).astype(jnp.bfloat16))
        cols["bqkv"].append((p["in_proj_b"] * qscale + p["ln1_b"] @ wq)[None, :])
        cols["wo"].append(p["out_proj_w"].T.astype(jnp.bfloat16))
        cols["bo"].append(p["out_proj_b"][None, :])
        wfc0 = p["c_fc_w"].T.astype(jnp.float32)                             # (D, 4D)
        cols["wfc"].append((p["ln2_w"][:, None] * wfc0).astype(jnp.bfloat16))
        cols["bfc"].append((p["c_fc_b"] + p["ln2_b"] @ wfc0)[None, :])
        cols["wpr"].append(p["c_proj_w"].T.astype(jnp.bfloat16))
        cols["bpr"].append(p["c_proj_b"][None, :])
    return {k: jnp.stack(v, axis=0) for k, v in cols.items()}


def reference_forward(x_sbd, layers_p, n_head):
    """Pure-JAX fp32 reference matching PyTorch semantics (eval, attn_mask=None)."""
    x = x_sbd.astype(jnp.float32)
    S, B, D = x.shape
    hd = D // n_head
    scale = 1.0 / float(hd) ** 0.5
    for p in layers_p:
        h = _layernorm(x, p["ln1_w"], p["ln1_b"])
        qkv = jnp.einsum('sbd,ed->sbe', h, p["in_proj_w"]) + p["in_proj_b"]
        q = (qkv[..., :D] * scale).reshape(S, B, n_head, hd)
        k = qkv[..., D:2 * D].reshape(S, B, n_head, hd)
        v = qkv[..., 2 * D:].reshape(S, B, n_head, hd)
        sc = jnp.einsum('sbhd,tbhd->bhst', q, k)
        pr = jax.nn.softmax(sc, axis=-1)
        ao = jnp.einsum('bhst,tbhd->sbhd', pr, v).reshape(S, B, D)
        attn = jnp.einsum('sbd,ed->sbe', ao, p["out_proj_w"]) + p["out_proj_b"]
        x = x + attn
        h2 = _layernorm(x, p["ln2_w"], p["ln2_b"])
        u = jnp.einsum('sbd,ed->sbe', h2, p["c_fc_w"]) + p["c_fc_b"]
        g = u * jax.nn.sigmoid(1.702 * u)
        m = jnp.einsum('sbe,de->sbd', g, p["c_proj_w"]) + p["c_proj_b"]
        x = x + m
    return x


if __name__ == "__main__":
    S, B, D, H, L = 8, 2, 32, 4, 2   # seq, batch, width, heads, layers
    key = jax.random.PRNGKey(0)
    kx, kp = jax.random.split(key)
    x = jax.random.normal(kx, (S, B, D), dtype=jnp.float32)

    torch_style = init_torch_params(kp, L, D)
    kparams = prep_kernel_params(torch_style, H)

    out = transformer_forward(x, kparams, H)
    out = jax.block_until_ready(out)

    ref = reference_forward(x, torch_style, H)
    assert out.shape == (S, B, D)
    # bf16 matmul operands + approx reciprocal -> slightly loosened tolerance.
    np.testing.assert_allclose(np.asarray(out), np.asarray(ref), rtol=2e-2, atol=2e-2)
    print("KERNEL_OK")
</pallas_src>

<mosaic_0001>
module attributes {stable_mosaic.version = 11 : i64} {
  func.func @kernel(%arg0: i32, %arg1: i32, %arg2: memref<1x8x32xf32, #tpu.memory_space<vmem>>, %arg3: memref<1x32x96xbf16, #tpu.memory_space<vmem>>, %arg4: memref<1x1x96xf32, #tpu.memory_space<vmem>>, %arg5: memref<1x32x32xbf16, #tpu.memory_space<vmem>>, %arg6: memref<1x1x32xf32, #tpu.memory_space<vmem>>, %arg7: memref<1x32x128xbf16, #tpu.memory_space<vmem>>, %arg8: memref<1x1x128xf32, #tpu.memory_space<vmem>>, %arg9: memref<1x128x32xbf16, #tpu.memory_space<vmem>>, %arg10: memref<1x1x32xf32, #tpu.memory_space<vmem>>, %arg11: memref<1x8x32xf32, #tpu.memory_space<vmem>>) attributes {dimension_semantics = [#tpu.dimension_semantics<parallel>, #tpu.dimension_semantics<arbitrary>], iteration_bounds = array<i64: 2, 2>, scalar_prefetch = 0 : i64, scratch_operands = 0 : i64, tpu.core_type = #tpu.core_type<tc>, window_params = [{transform_indices = @transform_0, window_bounds = array<i64: 1, 8, 32>}, {transform_indices = @transform_1, window_bounds = array<i64: 1, 32, 96>}, {transform_indices = @transform_2, window_bounds = array<i64: 1, 1, 96>}, {transform_indices = @transform_3, window_bounds = array<i64: 1, 32, 32>}, {transform_indices = @transform_4, window_bounds = array<i64: 1, 1, 32>}, {transform_indices = @transform_5, window_bounds = array<i64: 1, 32, 128>}, {transform_indices = @transform_6, window_bounds = array<i64: 1, 1, 128>}, {transform_indices = @transform_7, window_bounds = array<i64: 1, 128, 32>}, {transform_indices = @transform_8, window_bounds = array<i64: 1, 1, 32>}, {transform_indices = @transform_9, window_bounds = array<i64: 1, 8, 32>}]} {
    %c0_i32 = arith.constant 0 : i32
    %0 = arith.cmpi eq, %arg1, %c0_i32 : i32
    %1 = arith.extui %0 : i1 to i32
    %c0_i32_0 = arith.constant 0 : i32
    %2 = arith.cmpi ne, %1, %c0_i32_0 : i32
    scf.if %2 {
      %c0_49 = arith.constant 0 : index
      %c0_50 = arith.constant 0 : index
      %c0_51 = arith.constant 0 : index
      %140 = vector.load %arg2[%c0_49, %c0_50, %c0_51] : memref<1x8x32xf32, #tpu.memory_space<vmem>>, vector<1x8x32xf32>
      %c0_52 = arith.constant 0 : index
      %c0_53 = arith.constant 0 : index
      %c0_54 = arith.constant 0 : index
      %141 = vector.load %arg11[%c0_52, %c0_53, %c0_54] : memref<1x8x32xf32, #tpu.memory_space<vmem>>, vector<1x8x32xf32>
      tpu.vector_store %arg11[%c0_52, %c0_53, %c0_54], %140 {strides = array<i32>} : memref<1x8x32xf32, #tpu.memory_space<vmem>>, vector<1x8x32xf32>,
    } else {
    }
    %c0 = arith.constant 0 : index
    %c0_1 = arith.constant 0 : index
    %c0_2 = arith.constant 0 : index
    %3 = vector.load %arg11[%c0, %c0_1, %c0_2] : memref<1x8x32xf32, #tpu.memory_space<vmem>>, vector<1x8x32xf32>
    %4 = vector.shape_cast %3 : vector<1x8x32xf32> to vector<8x32xf32>
    %cst = arith.constant dense<0.000000e+00> : vector<8xf32>
    %5 = vector.multi_reduction <add>, %4, %cst [1] : vector<8x32xf32> to vector<8xf32>
    %6 = vector.shape_cast %5 : vector<8xf32> to vector<8x1xf32>
    %cst_3 = arith.constant 3.200000e+01 : f32
    %7 = vector.broadcast %cst_3 : f32 to vector<8x1xf32>
    %8 = arith.divf %6, %7 : vector<8x1xf32>
    %9 = vector.broadcast %8 : vector<8x1xf32> to vector<8x32xf32>
    %10 = arith.subf %4, %9 : vector<8x32xf32>
    %11 = arith.mulf %10, %10 : vector<8x32xf32>
    %cst_4 = arith.constant dense<0.000000e+00> : vector<8xf32>
    %12 = vector.multi_reduction <add>, %11, %cst_4 [1] : vector<8x32xf32> to vector<8xf32>
    %13 = vector.shape_cast %12 : vector<8xf32> to vector<8x1xf32>
    %cst_5 = arith.constant 3.200000e+01 : f32
    %14 = vector.broadcast %cst_5 : f32 to vector<8x1xf32>
    %15 = arith.divf %13, %14 : vector<8x1xf32>
    %16 = vector.broadcast %8 : vector<8x1xf32> to vector<8x32xf32>
    %17 = arith.subf %4, %16 : vector<8x32xf32>
    %cst_6 = arith.constant 9.99999974E-6 : f32
    %18 = vector.broadcast %cst_6 : f32 to vector<8x1xf32>
    %19 = arith.addf %15, %18 : vector<8x1xf32>
    %20 = math.rsqrt %19 : vector<8x1xf32>
    %21 = vector.broadcast %20 : vector<8x1xf32> to vector<8x32xf32>
    %22 = arith.mulf %17, %21 : vector<8x32xf32>
    %23 = arith.truncf %22 : vector<8x32xf32> to vector<8x32xbf16>
    %c0_7 = arith.constant 0 : index
    %c0_8 = arith.constant 0 : index
    %c0_9 = arith.constant 0 : index
    %24 = vector.load %arg3[%c0_7, %c0_8, %c0_9] : memref<1x32x96xbf16, #tpu.memory_space<vmem>>, vector<1x32x96xbf16>
    %25 = vector.shape_cast %24 : vector<1x32x96xbf16> to vector<32x96xbf16>
    %cst_10 = arith.constant dense<0.000000e+00> : vector<8x96xf32>
    %26 = tpu.matmul %23, %25, %cst_10 {dimension_numbers = #tpu.dot_dimension_numbers<[1], [0], [0], [1], [0, 0, 1, 1], [], []>} : vector<8x32xbf16>, vector<32x96xbf16>, vector<8x96xf32> -> vector<8x96xf32>
    %c0_11 = arith.constant 0 : index
    %c0_12 = arith.constant 0 : index
    %c0_13 = arith.constant 0 : index
    %27 = vector.load %arg4[%c0_11, %c0_12, %c0_13] : memref<1x1x96xf32, #tpu.memory_space<vmem>>, vector<1x1x96xf32>
    %28 = vector.shape_cast %27 : vector<1x1x96xf32> to vector<1x96xf32>
    %29 = vector.broadcast %28 : vector<1x96xf32> to vector<8x96xf32>
    %30 = arith.addf %26, %29 : vector<8x96xf32>
    %31 = vector.extract_strided_slice %30 {offsets = [0, 0], sizes = [8, 32], strides = [1, 1]} : vector<8x96xf32> to vector<8x32xf32>
    %32 = vector.extract_strided_slice %30 {offsets = [0, 32], sizes = [8, 32], strides = [1, 1]} : vector<8x96xf32> to vector<8x32xf32>
    %33 = vector.extract_strided_slice %30 {offsets = [0, 64], sizes = [8, 32], strides = [1, 1]} : vector<8x96xf32> to vector<8x32xf32>
    %34 = vector.extract_strided_slice %31 {offsets = [0, 0], sizes = [8, 8], strides = [1, 1]} : vector<8x32xf32> to vector<8x8xf32>
    %35 = vector.extract_strided_slice %32 {offsets = [0, 0], sizes = [8, 8], strides = [1, 1]} : vector<8x32xf32> to vector<8x8xf32>
    %36 = vector.extract_strided_slice %33 {offsets = [0, 0], sizes = [8, 8], strides = [1, 1]} : vector<8x32xf32> to vector<8x8xf32>
    %37 = vector.extract_strided_slice %31 {offsets = [0, 8], sizes = [8, 8], strides = [1, 1]} : vector<8x32xf32> to vector<8x8xf32>
    %38 = vector.extract_strided_slice %32 {offsets = [0, 8], sizes = [8, 8], strides = [1, 1]} : vector<8x32xf32> to vector<8x8xf32>
    %39 = vector.extract_strided_slice %33 {offsets = [0, 8], sizes = [8, 8], strides = [1, 1]} : vector<8x32xf32> to vector<8x8xf32>
    %40 = vector.extract_strided_slice %31 {offsets = [0, 16], sizes = [8, 8], strides = [1, 1]} : vector<8x32xf32> to vector<8x8xf32>
    %41 = vector.extract_strided_slice %32 {offsets = [0, 16], sizes = [8, 8], strides = [1, 1]} : vector<8x32xf32> to vector<8x8xf32>
    %42 = vector.extract_strided_slice %33 {offsets = [0, 16], sizes = [8, 8], strides = [1, 1]} : vector<8x32xf32> to vector<8x8xf32>
    %43 = vector.extract_strided_slice %31 {offsets = [0, 24], sizes = [8, 8], strides = [1, 1]} : vector<8x32xf32> to vector<8x8xf32>
    %44 = vector.extract_strided_slice %32 {offsets = [0, 24], sizes = [8, 8], strides = [1, 1]} : vector<8x32xf32> to vector<8x8xf32>
    %45 = vector.extract_strided_slice %33 {offsets = [0, 24], sizes = [8, 8], strides = [1, 1]} : vector<8x32xf32> to vector<8x8xf32>
    %46 = vector.shape_cast %34 : vector<8x8xf32> to vector<1x8x8xf32>
    %47 = vector.shape_cast %37 : vector<8x8xf32> to vector<1x8x8xf32>
    %48 = vector.shape_cast %40 : vector<8x8xf32> to vector<1x8x8xf32>
    %49 = vector.shape_cast %43 : vector<8x8xf32> to vector<1x8x8xf32>
    %50 = tpu.concatenate %46, %47, %48, %49 in 0 : vector<1x8x8xf32>, vector<1x8x8xf32>, vector<1x8x8xf32>, vector<1x8x8xf32> -> vector<4x8x8xf32>
    %51 = arith.truncf %50 : vector<4x8x8xf32> to vector<4x8x8xbf16>
    %52 = vector.shape_cast %35 : vector<8x8xf32> to vector<1x8x8xf32>
    %53 = vector.shape_cast %38 : vector<8x8xf32> to vector<1x8x8xf32>
    %54 = vector.shape_cast %41 : vector<8x8xf32> to vector<1x8x8xf32>
    %55 = vector.shape_cast %44 : vector<8x8xf32> to vector<1x8x8xf32>
    %56 = tpu.concatenate %52, %53, %54, %55 in 0 : vector<1x8x8xf32>, vector<1x8x8xf32>, vector<1x8x8xf32>, vector<1x8x8xf32> -> vector<4x8x8xf32>
    %57 = arith.truncf %56 : vector<4x8x8xf32> to vector<4x8x8xbf16>
    %58 = vector.shape_cast %36 : vector<8x8xf32> to vector<1x8x8xf32>
    %59 = vector.shape_cast %39 : vector<8x8xf32> to vector<1x8x8xf32>
    %60 = vector.shape_cast %42 : vector<8x8xf32> to vector<1x8x8xf32>
    %61 = vector.shape_cast %45 : vector<8x8xf32> to vector<1x8x8xf32>
    %62 = tpu.concatenate %58, %59, %60, %61 in 0 : vector<1x8x8xf32>, vector<1x8x8xf32>, vector<1x8x8xf32>, vector<1x8x8xf32> -> vector<4x8x8xf32>
    %63 = arith.truncf %62 : vector<4x8x8xf32> to vector<4x8x8xbf16>
    "tpu.trace_start"() <{level = 10 : i32, message = "bqd,bkd->bqk"}> : () -> ()
    %cst_14 = arith.constant dense<0.000000e+00> : vector<4x8x8xf32>
    %64 = tpu.matmul %51, %57, %cst_14 {dimension_numbers = #tpu.dot_dimension_numbers<[2], [2], [1], [1], [0, 0, 0, 1, 1, 1], [0], [0]>} : vector<4x8x8xbf16>, vector<4x8x8xbf16>, vector<4x8x8xf32> -> vector<4x8x8xf32>
    "tpu.trace_stop"() : () -> ()
    %cst_15 = arith.constant dense<0xFF800000> : vector<4x8xf32>
    %65 = vector.multi_reduction <maximumf>, %64, %cst_15 [2] : vector<4x8x8xf32> to vector<4x8xf32>
    %66 = vector.shape_cast %65 : vector<4x8xf32> to vector<4x8x1xf32>
    %67 = vector.broadcast %66 : vector<4x8x1xf32> to vector<4x8x8xf32>
    %68 = arith.subf %64, %67 : vector<4x8x8xf32>
    %69 = math.exp %68 : vector<4x8x8xf32>
    %cst_16 = arith.constant dense<0.000000e+00> : vector<4x8xf32>
    %70 = vector.multi_reduction <add>, %69, %cst_16 [2] : vector<4x8x8xf32> to vector<4x8xf32>
    %71 = vector.shape_cast %70 : vector<4x8xf32> to vector<4x8x1xf32>
    %72 = tpu.reciprocal %71 {approx = true} : vector<4x8x1xf32> -> vector<4x8x1xf32>
    %73 = vector.broadcast %72 : vector<4x8x1xf32> to vector<4x8x8xf32>
    %74 = arith.mulf %69, %73 : vector<4x8x8xf32>
    %75 = arith.truncf %74 : vector<4x8x8xf32> to vector<4x8x8xbf16>
    "tpu.trace_start"() <{level = 10 : i32, message = "bqk,bkd->bqd"}> : () -> ()
    %cst_17 = arith.constant dense<0.000000e+00> : vector<4x8x8xf32>
    %76 = tpu.matmul %75, %63, %cst_17 {dimension_numbers = #tpu.dot_dimension_numbers<[2], [1], [1], [2], [0, 0, 0, 1, 1, 2], [0], [0]>} : vector<4x8x8xbf16>, vector<4x8x8xbf16>, vector<4x8x8xf32> -> vector<4x8x8xf32>
    "tpu.trace_stop"() : () -> ()
    %77 = vector.extract_strided_slice %76 {offsets = [0, 0, 0], sizes = [1, 8, 8], strides = [1, 1, 1]} : vector<4x8x8xf32> to vector<1x8x8xf32>
    %78 = vector.shape_cast %77 : vector<1x8x8xf32> to vector<8x8xf32>
    %79 = vector.extract_strided_slice %76 {offsets = [1, 0, 0], sizes = [1, 8, 8], strides = [1, 1, 1]} : vector<4x8x8xf32> to vector<1x8x8xf32>
    %80 = vector.shape_cast %79 : vector<1x8x8xf32> to vector<8x8xf32>
    %81 = vector.extract_strided_slice %76 {offsets = [2, 0, 0], sizes = [1, 8, 8], strides = [1, 1, 1]} : vector<4x8x8xf32> to vector<1x8x8xf32>
    %82 = vector.shape_cast %81 : vector<1x8x8xf32> to vector<8x8xf32>
    %83 = vector.extract_strided_slice %76 {offsets = [3, 0, 0], sizes = [1, 8, 8], strides = [1, 1, 1]} : vector<4x8x8xf32> to vector<1x8x8xf32>
    %84 = vector.shape_cast %83 : vector<1x8x8xf32> to vector<8x8xf32>
    %85 = tpu.concatenate %78, %80, %82, %84 in 1 : vector<8x8xf32>, vector<8x8xf32>, vector<8x8xf32>, vector<8x8xf32> -> vector<8x32xf32>
    %86 = arith.truncf %85 : vector<8x32xf32> to vector<8x32xbf16>
    %c0_18 = arith.constant 0 : index
    %c0_19 = arith.constant 0 : index
    %c0_20 = arith.constant 0 : index
    %87 = vector.load %arg5[%c0_18, %c0_19, %c0_20] : memref<1x32x32xbf16, #tpu.memory_space<vmem>>, vector<1x32x32xbf16>
    %88 = vector.shape_cast %87 : vector<1x32x32xbf16> to vector<32x32xbf16>
    %cst_21 = arith.constant dense<0.000000e+00> : vector<8x32xf32>
    %89 = tpu.matmul %86, %88, %cst_21 {dimension_numbers = #tpu.dot_dimension_numbers<[1], [0], [0], [1], [0, 0, 1, 1], [], []>} : vector<8x32xbf16>, vector<32x32xbf16>, vector<8x32xf32> -> vector<8x32xf32>
    %c0_22 = arith.constant 0 : index
    %c0_23 = arith.constant 0 : index
    %c0_24 = arith.constant 0 : index
    %90 = vector.load %arg6[%c0_22, %c0_23, %c0_24] : memref<1x1x32xf32, #tpu.memory_space<vmem>>, vector<1x1x32xf32>
    %91 = vector.shape_cast %90 : vector<1x1x32xf32> to vector<1x32xf32>
    %92 = vector.broadcast %91 : vector<1x32xf32> to vector<8x32xf32>
    %93 = arith.addf %89, %92 : vector<8x32xf32>
    %94 = arith.addf %4, %93 : vector<8x32xf32>
    %cst_25 = arith.constant dense<0.000000e+00> : vector<8xf32>
    %95 = vector.multi_reduction <add>, %94, %cst_25 [1] : vector<8x32xf32> to vector<8xf32>
    %96 = vector.shape_cast %95 : vector<8xf32> to vector<8x1xf32>
    %cst_26 = arith.constant 3.200000e+01 : f32
    %97 = vector.broadcast %cst_26 : f32 to vector<8x1xf32>
    %98 = arith.divf %96, %97 : vector<8x1xf32>
    %99 = vector.broadcast %98 : vector<8x1xf32> to vector<8x32xf32>
    %100 = arith.subf %94, %99 : vector<8x32xf32>
    %101 = arith.mulf %100, %100 : vector<8x32xf32>
    %cst_27 = arith.constant dense<0.000000e+00> : vector<8xf32>
    %102 = vector.multi_reduction <add>, %101, %cst_27 [1] : vector<8x32xf32> to vector<8xf32>
    %103 = vector.shape_cast %102 : vector<8xf32> to vector<8x1xf32>
    %cst_28 = arith.constant 3.200000e+01 : f32
    %104 = vector.broadcast %cst_28 : f32 to vector<8x1xf32>
    %105 = arith.divf %103, %104 : vector<8x1xf32>
    %106 = vector.broadcast %98 : vector<8x1xf32> to vector<8x32xf32>
    %107 = arith.subf %94, %106 : vector<8x32xf32>
    %cst_29 = arith.constant 9.99999974E-6 : f32
    %108 = vector.broadcast %cst_29 : f32 to vector<8x1xf32>
    %109 = arith.addf %105, %108 : vector<8x1xf32>
    %110 = math.rsqrt %109 : vector<8x1xf32>
    %111 = vector.broadcast %110 : vector<8x1xf32> to vector<8x32xf32>
    %112 = arith.mulf %107, %111 : vector<8x32xf32>
    %113 = arith.truncf %112 : vector<8x32xf32> to vector<8x32xbf16>
    %c0_30 = arith.constant 0 : index
    %c0_31 = arith.constant 0 : index
    %c0_32 = arith.constant 0 : index
    %114 = vector.load %arg7[%c0_30, %c0_31, %c0_32] : memref<1x32x128xbf16, #tpu.memory_space<vmem>>, vector<1x32x128xbf16>
    %115 = vector.shape_cast %114 : vector<1x32x128xbf16> to vector<32x128xbf16>
    %cst_33 = arith.constant dense<0.000000e+00> : vector<8x128xf32>
    %116 = tpu.matmul %113, %115, %cst_33 {dimension_numbers = #tpu.dot_dimension_numbers<[1], [0], [0], [1], [0, 0, 1, 1], [], []>} : vector<8x32xbf16>, vector<32x128xbf16>, vector<8x128xf32> -> vector<8x128xf32>
    %c0_34 = arith.constant 0 : index
    %c0_35 = arith.constant 0 : index
    %c0_36 = arith.constant 0 : index
    %117 = vector.load %arg8[%c0_34, %c0_35, %c0_36] : memref<1x1x128xf32, #tpu.memory_space<vmem>>, vector<1x1x128xf32>
    %118 = vector.shape_cast %117 : vector<1x1x128xf32> to vector<1x128xf32>
    %119 = vector.broadcast %118 : vector<1x128xf32> to vector<8x128xf32>
    %120 = arith.addf %116, %119 : vector<8x128xf32>
    %cst_37 = arith.constant 1.702000e+00 : f32
    %121 = vector.broadcast %cst_37 : f32 to vector<8x128xf32>
    %122 = arith.mulf %121, %120 : vector<8x128xf32>
    %123 = arith.negf %122 : vector<8x128xf32>
    %124 = math.exp %123 : vector<8x128xf32>
    %cst_38 = arith.constant 1.000000e+00 : f32
    %125 = vector.broadcast %cst_38 : f32 to vector<8x128xf32>
    %126 = arith.addf %125, %124 : vector<8x128xf32>
    %127 = arith.divf %125, %126 : vector<8x128xf32>
    %128 = arith.mulf %120, %127 : vector<8x128xf32>
    %129 = arith.truncf %128 : vector<8x128xf32> to vector<8x128xbf16>
    %c0_39 = arith.constant 0 : index
    %c0_40 = arith.constant 0 : index
    %c0_41 = arith.constant 0 : index
    %130 = vector.load %arg9[%c0_39, %c0_40, %c0_41] : memref<1x128x32xbf16, #tpu.memory_space<vmem>>, vector<1x128x32xbf16>
    %131 = vector.shape_cast %130 : vector<1x128x32xbf16> to vector<128x32xbf16>
    %cst_42 = arith.constant dense<0.000000e+00> : vector<8x32xf32>
    %132 = tpu.matmul %129, %131, %cst_42 {dimension_numbers = #tpu.dot_dimension_numbers<[1], [0], [0], [1], [0, 0, 1, 1], [], []>} : vector<8x128xbf16>, vector<128x32xbf16>, vector<8x32xf32> -> vector<8x32xf32>
    %c0_43 = arith.constant 0 : index
    %c0_44 = arith.constant 0 : index
    %c0_45 = arith.constant 0 : index
    %133 = vector.load %arg10[%c0_43, %c0_44, %c0_45] : memref<1x1x32xf32, #tpu.memory_space<vmem>>, vector<1x1x32xf32>
    %134 = vector.shape_cast %133 : vector<1x1x32xf32> to vector<1x32xf32>
    %135 = vector.broadcast %134 : vector<1x32xf32> to vector<8x32xf32>
    %136 = arith.addf %132, %135 : vector<8x32xf32>
    %137 = arith.addf %94, %136 : vector<8x32xf32>
    %138 = vector.shape_cast %137 : vector<8x32xf32> to vector<1x8x32xf32>
    %c0_46 = arith.constant 0 : index
    %c0_47 = arith.constant 0 : index
    %c0_48 = arith.constant 0 : index
    %139 = vector.load %arg11[%c0_46, %c0_47, %c0_48] : memref<1x8x32xf32, #tpu.memory_space<vmem>>, vector<1x8x32xf32>
    tpu.vector_store %arg11[%c0_46, %c0_47, %c0_48], %138 {strides = array<i32>} : memref<1x8x32xf32, #tpu.memory_space<vmem>>, vector<1x8x32xf32>,
    return
  }
  func.func @transform_0(%arg0: i32, %arg1: i32) -> (i32, i32, i32) {
    %c0_i32 = arith.constant 0 : i32
    %c0_i32_0 = arith.constant 0 : i32
    %c0_i32_1 = arith.constant 0 : i32
    return %arg0, %c0_i32, %c0_i32_0 : i32, i32, i32
  }
  func.func @transform_1(%arg0: i32, %arg1: i32) -> (i32, i32, i32) {
    %c0_i32 = arith.constant 0 : i32
    %c0_i32_0 = arith.constant 0 : i32
    %c0_i32_1 = arith.constant 0 : i32
    return %arg1, %c0_i32, %c0_i32_0 : i32, i32, i32
  }
  func.func @transform_2(%arg0: i32, %arg1: i32) -> (i32, i32, i32) {
    %c0_i32 = arith.constant 0 : i32
    %c0_i32_0 = arith.constant 0 : i32
    %c0_i32_1 = arith.constant 0 : i32
    return %arg1, %c0_i32, %c0_i32_0 : i32, i32, i32
  }
  func.func @transform_3(%arg0: i32, %arg1: i32) -> (i32, i32, i32) {
    %c0_i32 = arith.constant 0 : i32
    %c0_i32_0 = arith.constant 0 : i32
    %c0_i32_1 = arith.constant 0 : i32
    return %arg1, %c0_i32, %c0_i32_0 : i32, i32, i32
  }
  func.func @transform_4(%arg0: i32, %arg1: i32) -> (i32, i32, i32) {
    %c0_i32 = arith.constant 0 : i32
    %c0_i32_0 = arith.constant 0 : i32
    %c0_i32_1 = arith.constant 0 : i32
    return %arg1, %c0_i32, %c0_i32_0 : i32, i32, i32
  }
  func.func @transform_5(%arg0: i32, %arg1: i32) -> (i32, i32, i32) {
    %c0_i32 = arith.constant 0 : i32
    %c0_i32_0 = arith.constant 0 : i32
    %c0_i32_1 = arith.constant 0 : i32
    return %arg1, %c0_i32, %c0_i32_0 : i32, i32, i32
  }
  func.func @transform_6(%arg0: i32, %arg1: i32) -> (i32, i32, i32) {
    %c0_i32 = arith.constant 0 : i32
    %c0_i32_0 = arith.constant 0 : i32
    %c0_i32_1 = arith.constant 0 : i32
    return %arg1, %c0_i32, %c0_i32_0 : i32, i32, i32
  }
  func.func @transform_7(%arg0: i32, %arg1: i32) -> (i32, i32, i32) {
    %c0_i32 = arith.constant 0 : i32
    %c0_i32_0 = arith.constant 0 : i32
    %c0_i32_1 = arith.constant 0 : i32
    return %arg1, %c0_i32, %c0_i32_0 : i32, i32, i32
  }
  func.func @transform_8(%arg0: i32, %arg1: i32) -> (i32, i32, i32) {
    %c0_i32 = arith.constant 0 : i32
    %c0_i32_0 = arith.constant 0 : i32
    %c0_i32_1 = arith.constant 0 : i32
    return %arg1, %c0_i32, %c0_i32_0 : i32, i32, i32
  }
  func.func @transform_9(%arg0: i32, %arg1: i32) -> (i32, i32, i32) {
    %c0_i32 = arith.constant 0 : i32
    %c0_i32_0 = arith.constant 0 : i32
    %c0_i32_1 = arith.constant 0 : i32
    return %arg0, %c0_i32, %c0_i32_0 : i32, i32, i32
  }
}

</mosaic_0001>

<bundles_post_ra>
// kernel: tpu_custom_call.1
= control target key start
LH: loop header
LB: loop body
LE: loop exit
PB: predicated region body
PF: predicated region fallthrough
CT: control target
= control target key end

     0   :  { %s2257_s0 = inlined_call_operand.vmem [shape: f32[2,8,32], index: 0, kind: input, shape index: {}]   ;;  %s2258_s1 = inlined_call_operand.vmem [shape: bf16[2,32,96], index: 1, kind: input, shape index: {}]   ;;  %s2259_s2 = inlined_call_operand.vmem [shape: f32[2,1,96], index: 2, kind: input, shape index: {}]   ;;  %s2260_s3 = inlined_call_operand.vmem [shape: bf16[2,32,32], index: 3, kind: input, shape index: {}]   ;;  %s2261_s4 = inlined_call_operand.vmem [shape: f32[2,1,32], index: 4, kind: input, shape index: {}]   ;;  %s2262_s5 = inlined_call_operand.vmem [shape: bf16[2,32,128], index: 5, kind: input, shape index: {}]   ;;  %s2263_s6 = inlined_call_operand.vmem [shape: f32[2,1,128], index: 6, kind: input, shape index: {}]   ;;  %s2264_s7 = inlined_call_operand.vmem [shape: bf16[2,128,32], index: 7, kind: input, shape index: {}]   ;;  %s2265_s8 = inlined_call_operand.vmem [shape: f32[2,1,32], index: 8, kind: input, shape index: {}]   ;;  %s2266_s9 = inlined_call_operand.hbm [shape: f32[2,8,32], index: 9, kind: output, shape index: {}]  }
   0x1   :  { %2279 = sst [smem:[#allocation15_spill]] %s2257_s0 }
   0x2   :  { %2280 = sst [smem:[#allocation16_spill]] %s2258_s1 }
   0x3   :  { %2281 = sst [smem:[#allocation17_spill]] %s2260_s3 }
   0x4   :  { %2282 = sst [smem:[#allocation18_spill]] %s2266_s9 }
   0x5   :  { %14 = vsyncpa [#allocation3], 0 }
   0x6   :  { %16 = vsyncpa [#allocation3 + $0x1], 0  ;;  %s1930_s30 = smov 0   ;;  %s1932_s10 = smov 0  }
   0x7   :  { %s1934_s11 = smov 0   ;;  %s1936_s12 = smov 0  }
   0x8   :  { %s1938_s13 = smov 0   ;;  %s1940_s14 = smov 0  }
   0x9   :  { %s1942_s15 = smov 0   ;;  %s1944_s16 = smov 0  }
   0xa LB: > { %2283 = sst [smem:[#allocation5_spill]] %s1839_s30  ;;  %s1474_s17 = sadd.s32 4294967295, %s1867_s16   ;;  %s1867_s16 = sphi %s1944_s16, %s22_s16   ;;  %s1863_s15 = sphi %s1942_s15, %s2311_s15   ;;  %s1859_s14 = sphi %s1940_s14, %s2310_s14   ;;  %s1855_s13 = sphi %s1938_s13, %s2309_s13   ;;  %s1851_s12 = sphi %s1936_s12, %s2308_s12   ;;  %s1847_s11 = sphi %s1934_s11, %s2307_s11   ;;  %s1843_s10 = sphi %s1932_s10, %s2313_s10   ;;  %s1839_s30 = sphi %s1930_s30, %s2312_s30  }
   0xb   : > { %2284 = sst [smem:[#allocation6_spill]] %s1847_s11  ;;  %s1475_s18 = sadd.s32 4294967294, %s1867_s16  }
   0xc   : > { %2285 = sst [smem:[#allocation7_spill]] %s1859_s14  ;;  %s31_s19 = sadd.s32 1, %s1859_s14 }
   0xd   : > { %2286 = sst [smem:[#allocation8_spill]] %s1863_s15  ;;  %p32_p0 = scmp.ge.s32.totalorder %s31_s19, 2 }
   0xe   : > { %2287 = sst [smem:[#allocation9_spill]] %s1867_s16  ;;  %s34_s20 = sadd.s32 1, %s1863_s15 }
   0xf   : > { %p285_p1 = scmp.ne.s32.totalorder %s1847_s11, %s1843_s10  ;;  %p286_p2 = scmp.eq.s32.totalorder %s1474_s17, 3 }
  0x10   : > { %s2315_s19 = smov (%p32_p0, %s31_s19), 0  ;;  %s2317_s20 = smov (!%p32_p0, %s34_s20), %s1863_s15 }
  0x11   : > { %2288 = sst [smem:[#allocation10_spill]] %s2315_s19  ;;  %p1979_p3 = por %p286_p2, %p285_p1 }
  0x12   : > { %p291_p4 = scmp.ne.s32.totalorder %s1843_s10, %s1839_s30  ;;  %p36_p5 = scmp.ge.s32.totalorder %s2317_s20, 2 }
  0x13   : > { %s2289_s21 = scalar_select %p1979_p3, 1, 0 }
  0x14   : > { %p292_p6 = scmp.eq.s32.totalorder %s1475_s18, 3  ;;  %p1478_p7 = scmp.ge.s32.totalorder %s1867_s16, 1 }
  0x15   : > { %2290 = sst [smem:[#allocation11_spill]] %s2289_s21  ;;  %p373_p8 = scmp.lt.s32.totalorder %s1867_s16, 5 }
  0x16   : > { %s2319_s20 = smov (%p36_p5, %s2317_s20), 0  ;;  %p1989_p9 = por %p292_p6, %p291_p4 }
  0x17   : > { %2291 = sst [smem:[#allocation12_spill]] %s2319_s20  ;;  %p374_p10 = pnand %p1478_p7, %p373_p8 }
  0x18   : > { %s2292_s22 = scalar_select %p1989_p9, 1, 0 }
  0x19   : > { %s272_s23 = ssub.s32 %s1863_s15, %s2319_s20  ;;  %s275_s24 = sadd.s32 1, %s1847_s11 }
  0x1a   : > { %2293 = sst [smem:[#allocation13_spill]] %s2292_s22  ;;  %p273_p11 = scmp.eq.s32.totalorder %s272_s23, 0 }
  0x1b   : > { %377 = sbr.rel (%p374_p10) target bundleno = 2682 (0xa7a), region = 56  ;;  %s2269_s26 = sand.u32 (!%p374_p10), 1, %s1843_s10  }
  0x1c   : > { %s1997_s25 = scalar_select %p273_p11, %s1847_s11, %s275_s24  }
  0x1d   : > { %p440_p12 = scmp.lt.s32.totalorder (!%p374_p10), %s1855_s13, 1  ;;  %s1479_s27 = sshll.u32 (!%p374_p10), %s2269_s26, 3 }
  0x1e   : > { %2294 = sst [smem:[#allocation14_spill]] %s1997_s25  ;;  %p444_p13 = scmp.lt.s32.totalorder (!%p374_p10), %s1851_s12, 1 }
  0x1f   : > { %s2295_s0 = sld [smem:[#allocation15_spill]] (!%p374_p10)  ;;  %s2296_s1 = sld [smem:[#allocation16_spill]] (!%p374_p10) }
  0x20   : > { %s2297_s3 = sld [smem:[#allocation17_spill]] (!%p374_p10)  ;;  %s2049_s9 = scalar_lea.vmem (!%p374_p10), [#allocation2], %s1479_s27 }
  0x21   : > { %p1489_p0 = scmp.ne.s32.totalorder (!%p374_p10), %s1851_s12, 0 }
  0x22   : > { %s441_s28 = scalar_select %p440_p12, %s1855_s13, 1 }
  0x23   : > { %s2006_s29 = scalar_select %p444_p13, %s1851_s12, 1 }
  0x24   : > { %s1480_s17 = sshll.u32 %s441_s28, 3  ;;  %480 = sbr.rel (%p1489_p0) target bundleno = 43 (0x2b), region = 60  ;;  %vm482_vm0 = vcmask (!%p1489_p0), 261120  }
  0x25   : > { %s443_s24 = scalar_lea.vmem %s2295_s0, %s1480_s17  ;;  %s1524_s20 = sshll.u32 %s2006_s29, 4 }
  0x26   : > { %s2015_s26 = scalar_lea.vmem %s2296_s1, %s1524_s20  ;;  %s2024_s16 = scalar_lea.vmem %s2297_s3, %s1524_s20  ;;  %v481_v0 = vld [vmem:[%s443_s24] sm:$0xff] (!%p1489_p0) }
  0x27   : > { %s459_s18 = scalar_lea.vmem %s2261_s4, %s2006_s29  ;;  %s2033_s0 = scalar_lea.vmem %s2262_s5, %s1524_s20  ;;  %483 = vst.msk [vmem:[%s2049_s9] sm:$0xff] (!%p1489_p0), %vm482_vm0, %v481_v0 }
  0x28   : > { %s467_s1 = scalar_lea.vmem %s2263_s6, %s2006_s29  ;;  %s1527_s14 = sshll.u32 %s2006_s29, 6 }
  0x29   : > { %s475_s30 = scalar_lea.vmem %s2265_s8, %s2006_s29  ;;  %s2047_s21 = scalar_lea.vmem %s2264_s7, %s1527_s14 }
  0x2b PF: > { %vm485_vm1 = vcmask 261120   ;;  %v1735_v8 = vld [vmem:[%s2015_s26] sm:$0xff]   ;;  %v1869_v9 = vmov 0.0   ;;  %vm1870_vm2 = vmmov 0   ;;  %v1736_v10 = vld [vmem:[%s2015_s26 + $0x8] sm:$0xff]   ;;  %s2298_s12 = scalar_lea.vmem %s2259_s2, %s2006_s29  ;;  %s1871_s20 = smov 104  }
  0x2c   : > { %1562 = vmatprep.subr.bf16.mxu0 %v1869_v9  ;;  %1566 = vmatprep.mubr.msk.bf16.mxu0 %vm1870_vm2, %v1869_v9  ;;  %v1490_v17 = vld [vmem:[%s2298_s12] ss:$0 sm:$0xff]  ;;  %s1872_s26 = smov 120   ;;  %s1873_s27 = smov 112   ;;  %vm584_vm3 = vcmask 64512   ;;  %vm831_vm4 = vcmask 1043456  }
  0x2d   : > { %1563 = vmatpush3.bf16.msra.mxu0 %v1735_v8  ;;  %1582 = vmatprep.subr.bf16.mxu1 %v1869_v9  ;;  %s1874_s24 = smov 96   ;;  %s1875_s28 = smov 64   ;;  %vm1032_vm5 = vcmask 130048   ;;  %vm1034_vm6 = vcmask 195584  }
  0x2e   : > { %v2054_v1 = vld [vmem:[%s2049_s9] sm:$0xff]  ;;  %1564 = vmatprep.subr.bf16.mxu0 %v1869_v9  ;;  %1584 = vmatprep.mubr.msk.bf16.mxu1 %vm1870_vm2, %v1869_v9  ;;  %s1876_s17 = smov 8   ;;  %s1877_s23 = smov 16  }
  0x2f   : > { %v486_v2 = vsel %vm485_vm1, %v2054_v1, 0.0  ;;  %s1878_s15 = smov 24   ;;  %s1521_s25 = sshll.u32 %s1855_s13, 7 }
  0x30   : > { %487 = vadd.xlane.f32.xlu0 %v486_v2  ;;  %s1320_s22 = sshll.u32 %s2049_s9, 4  ;;  %s2300_s12 = sld [smem:[#allocation18_spill]]  ;;  %s2202_s22 = int_to_ptr.vmem [resolvable:$true] %s1320_s22 }
  0x31   : > { %1565 = vmatpush3.bf16.msra.mxu0 %v1736_v10  ;;  %s2302_s13 = sand.u32 1, %s1843_s10  }
  0x32   : > { %1570 = vmatprep.subr.bf16.mxu0 %v1869_v9  ;;  %s1307_s29 = scalar_lea.sflag [#allocation3], %s2302_s13 }
  0xbd   : > { %v488_v3 = vpop.xlane.xlu0 %487 }
  0xbe   : > { %v490_v4 = vmul.f32 0.03125, %v488_v3 }
  0xc0   : > { %v491_v5 = vsub.f32 %v2054_v1, %v490_v4 }
  0xc2   : > { %v492_v6 = vmul.f32 %v491_v5, %v491_v5 }
  0xc4   : > { %v493_v7 = vsel %vm485_vm1, %v492_v6, 0.0 }
  0xc5   : > { %494 = vadd.xlane.f32.xlu0 %v493_v7 }
 0x152   : > { %v495_v11 = vpop.xlane.xlu0 %494 }
 0x153   : > { %v496_v12 = vmul.f32 0.03125, %v495_v11 }
 0x155   : > { %v497_v13 = vadd.f32 1e-05, %v496_v12 }
 0x157   : > { %1749 = vrsqrt.f32 %v497_v13 }
 0x161   : > { %v1750_v14 = vpop.eup %1749 }
 0x162   : > { %v499_v15 = vmul.f32 %v1750_v14, %v491_v5 }
 0x164   : > { %v500_v16 = vpack.c.bf16 %v499_v15, %v499_v15 }
 0x166   : > { %1567 = vmatmul.mubr.msk.bf16.vlgmr.msra.gmra.mrb[0].mxu0 %vm485_vm1, %v500_v16 }
 0x167   : > { %1572 = vmatprep.mubr.msk.bf16.mxu0 %vm1870_vm2, %v1869_v9 }
 0x239   : > { %v561_v18 = vpop.f32.mrb[0].mxu0 }
 0x23a   : > { %v562_v19 = vadd.f32 %v1490_v17, %v561_v18  ;;  %v1568_v20 = vpop.f32.mrb[1].mxu0 }
 0x23b   : > { %v564_v21 = vpop.f32.mrb[2].mxu0 }
 0x23c   : > { %574 = vrot.lane.b32.xlu0 %v562_v19, %s1871_s20  ;;  %568 = vrot.lane.b32.xlu1 %v562_v19, %s1872_s26  ;;  %v1569_v22 = vpop.f32.mrb[3].mxu0  ;;  %v577_v23 = vpack.c.bf16 %v562_v19, %v562_v19  ;;  %s2301_s20 = smov %s2300_s12  ;;  %s2200_s26 = scalar_lea.hbm %s2300_s12, %s1521_s25 }
 0x240   : > { %571 = vrot.lane.b32.xlu1 %v562_v19, %s1873_s27  ;;  %s1879_s27 = smov [#allocation2]  }
 0x244   : > { %582 = vrot.lane.b32.xlu1 %v577_v23, %s1874_s24 }
 0x2ae   : > { %v569_v24 = vpop.permute.xlu1 %568  ;;  %v575_v28 = vpop.permute.xlu0 %574 }
 0x2af   : > { %v2078_v25 = vpack.c.bf16 %v569_v24, %v569_v24  ;;  %v2084_v30 = vpack.c.bf16 %v575_v28, %v575_v28 }
 0x2b1   : > { %632 = vrot.lane.b32.xlu1 %v2078_v25, %s1874_s24 }
 0x2b2   : > { %v572_v26 = vpop.permute.xlu1 %571 }
 0x2b3   : > { %v2081_v27 = vpack.c.bf16 %v572_v26, %v572_v26 }
 0x2b5   : > { %681 = vrot.lane.b32.xlu1 %v2081_v27, %s1874_s24 }
 0x2b6   : > { %v583_v29 = vpop.permute.xlu1 %582 }
 0x2b7   : > { %v589_v31 = vsel %vm584_vm3, %v583_v29, 0 }
 0x2b8   : > { %1571 = vmatpush3.bf16.xpose.msra.mxu0 %v589_v31 }
 0x2b9   : > { %730 = vrot.lane.b32.xlu1 %v2084_v30, %s1874_s24  ;;  %1576 = vmatprep.subr.bf16.mxu0 %v1869_v9  ;;  %s1777_s24 = sshll.u32 %s1879_s27, 4  ;;  %s1778_s24 = int_to_ptr.vmem [resolvable:$false] %s1777_s24 }
 0x2ba   : > { %p1780_p5 = scmp.lt.s32.totalorder %s2202_s22, %s1778_s24 }
 0x2bf   : > { %1573 = vmatmul.mubr.msk.bf16.vlgmr.msra.gmra.mrb[4].mxu0 %vm584_vm3, %v577_v23 }
 0x2c0   : > { %1578 = vmatprep.mubr.msk.bf16.mxu0 %vm1870_vm2, %v1869_v9 }
 0x323   : > { %v633_v32 = vpop.permute.xlu1 %632 }
 0x324   : > { %v638_v33 = vsel %vm584_vm3, %v633_v32, 0 }
 0x325   : > { %1577 = vmatpush3.bf16.xpose.msra.mxu0 %v638_v33 }
 0x326   : > { %1588 = vmatprep.subr.bf16.mxu0 %v1869_v9 }
 0x327   : > { %v682_v34 = vpop.permute.xlu1 %681 }
 0x328   : > { %v687_v35 = vsel %vm584_vm3, %v682_v34, 0 }
 0x329   : > { %1583 = vmatpush3.bf16.xpose.msra.mxu1 %v687_v35 }
 0x32a   : > { %1594 = vmatprep.subr.bf16.mxu1 %v1869_v9 }
 0x32b   : > { %v731_v36 = vpop.permute.xlu1 %730 }
 0x32c   : > { %v736_v37 = vsel %vm584_vm3, %v731_v36, 0  ;;  %1579 = vmatmul.mubr.msk.bf16.vlgmr.msra.gmra.mrb[8].mxu0 %vm584_vm3, %v2078_v25 }
 0x32d   : > { %1589 = vmatpush3.bf16.xpose.msra.mxu0 %v736_v37  ;;  %1590 = vmatprep.mubr.msk.bf16.mxu0 %vm1870_vm2, %v1869_v9 }
 0x32e   : > { %1600 = vmatprep.subr.bf16.mxu0 %v1869_v9 }
 0x330   : > { %1585 = vmatmul.mubr.msk.bf16.vlgmr.msra.gmra.mrb[0].mxu1 %vm584_vm3, %v2081_v27 }
 0x331   : > { %1596 = vmatprep.mubr.msk.bf16.mxu1 %vm1870_vm2, %v1869_v9 }
 0x334   : > { %1591 = vmatmul.mubr.msk.bf16.vlgmr.msra.gmra.mrb[12].mxu0 %vm584_vm3, %v2084_v30 }
 0x335   : > { %1602 = vmatprep.mubr.msk.bf16.mxu0 %vm1870_vm2, %v1869_v9 }
 0x392   : > { %v625_v38 = vpop.f32.mrb[4].mxu0 }
 0x393   : > { %v1574_v39 = vpop.f32.mrb[5].mxu0  ;;  %v778_v40 = vsel %vm584_vm3, %v625_v38, -inf }
 0x394   : > { %779 = vmax.xlane.f32.xlu1 %v778_v40  ;;  %v628_v41 = vpop.f32.mrb[6].mxu0 }
 0x395   : > { %v1575_v42 = vpop.f32.mrb[7].mxu0 }
 0x3ff   : > { %v674_v43 = vpop.f32.mrb[8].mxu0 }
 0x400   : > { %v1580_v44 = vpop.f32.mrb[9].mxu0  ;;  %v781_v45 = vsel %vm584_vm3, %v674_v43, -inf }
 0x401   : > { %782 = vmax.xlane.f32.xlu0 %v781_v45  ;;  %v677_v46 = vpop.f32.mrb[10].mxu0  ;;  %v1737_v44 = vld [vmem:[%s2024_s16] sm:$0xff]   ;;  %v1738_v45 = vld [vmem:[%s2024_s16 + $0x8] sm:$0xff]  }
 0x402   : > { %v1581_v47 = vpop.f32.mrb[11].mxu0 }
 0x403   : > { %v723_v48 = vpop.f32.mrb[0].mxu1 }
 0x404   : > { %v1586_v49 = vpop.f32.mrb[1].mxu1  ;;  %v784_v50 = vsel %vm584_vm3, %v723_v48, -inf }
 0x405   : > { %v726_v51 = vpop.f32.mrb[2].mxu1  ;;  %785 = vmax.xlane.f32.xlu1 %v784_v50 }
 0x406   : > { %v1587_v52 = vpop.f32.mrb[3].mxu1 }
 0x407   : > { %v772_v53 = vpop.f32.mrb[12].mxu0 }
 0x408   : > { %v1592_v54 = vpop.f32.mrb[13].mxu0  ;;  %v787_v55 = vsel %vm584_vm3, %v772_v53, -inf }
 0x409   : > { %788 = vmax.xlane.f32.xlu0 %v787_v55  ;;  %v775_v56 = vpop.f32.mrb[14].mxu0 }
 0x40a   : > { %v1593_v57 = vpop.f32.mrb[15].mxu0 }
 0x416   : > { %826 = vrot.lane.b32.xlu1 %v577_v23, %s1875_s28 }
 0x421   : > { %v780_v58 = vpop.xlane.xlu1 %779 }
 0x422   : > { %v790_v59 = vsub.f32 %v625_v38, %v780_v58 }
 0x424   : > { %v794_v60 = vmul.f32 1.442695, %v790_v59 }
 0x426   : > { %1751 = vpow2.f32 %v794_v60 }
 0x430   : > { %v1752_v61 = vpop.eup %1751 }
 0x431   : > { %v802_v62 = vsel %vm584_vm3, %v1752_v61, 0.0 }
 0x43a   : > { %803 = vadd.xlane.f32.xlu1 %v802_v62 }
 0x48e   : > { %v783_v63 = vpop.xlane.xlu0 %782 }
 0x48f   : > { %v791_v0 = vsub.f32 %v674_v43, %v783_v63 }
 0x491   : > { %v796_v2 = vmul.f32 1.442695, %v791_v0 }
 0x492   : > { %v786_v3 = vpop.xlane.xlu1 %785 }
 0x493   : > { %1753 = vpow2.f32 %v796_v2  ;;  %v792_v4 = vsub.f32 %v723_v48, %v786_v3  ;;  %v1502_v2 = vld [vmem:[%s459_s18] ss:$0 sm:$0xff] }
 0x495   : > { %v798_v5 = vmul.f32 1.442695, %v792_v4 }
 0x496   : > { %v827_v6 = vpop.permute.xlu1 %826  ;;  %v789_v7 = vpop.xlane.xlu0 %788 }
 0x497   : > { %1755 = vpow2.f32 %v798_v5  ;;  %v833_v8 = vsel %vm831_vm4, %v827_v6, 0  ;;  %v793_v10 = vsub.f32 %v772_v53, %v789_v7 }
 0x498   : > { %1595 = vmatpush3.bf16.msra.mxu1 %v833_v8 }
 0x499   : > { %v800_v11 = vmul.f32 1.442695, %v793_v10  ;;  %1606 = vmatprep.subr.bf16.mxu1 %v1869_v9 }
 0x49b   : > { %1757 = vpow2.f32 %v800_v11 }
 0x49d   : > { %v1754_v12 = vpop.eup %1753 }
 0x49e   : > { %v805_v13 = vsel %vm584_vm3, %v1754_v12, 0.0 }
 0x49f   : > { %806 = vadd.xlane.f32.xlu0 %v805_v13 }
 0x4a1   : > { %v1756_v14 = vpop.eup %1755 }
 0x4a2   : > { %v808_v15 = vsel %vm584_vm3, %v1756_v14, 0.0 }
 0x4a3   : > { %809 = vadd.xlane.f32.xlu1 %v808_v15 }
 0x4a5   : > { %v1758_v16 = vpop.eup %1757 }
 0x4a6   : > { %v811_v17 = vsel %vm584_vm3, %v1758_v16, 0.0 }
 0x4a7   : > { %812 = vadd.xlane.f32.xlu0 %v811_v17 }
 0x4b4   : > { %923 = vrot.lane.b32.xlu1 %v2081_v27, %s1875_s28 }
 0x4b8   : > { %971 = vrot.lane.b32.xlu1 %v2084_v30, %s1875_s28 }
 0x4bd   : > { %875 = vrot.lane.b32.xlu0 %v2078_v25, %s1875_s28  ;;  %s1779_s28 = scalar_lea.vmem %s1778_s24, 256 }
 0x4c7   : > { %v804_v18 = vpop.xlane.xlu1 %803 }
 0x4c8   : > { %1759 = vrcp.f32 %v804_v18 }
 0x4d2   : > { %v1760_v19 = vpop.eup %1759 }
 0x4d3   : > { %v818_v20 = vmul.f32 %v1760_v19, %v1752_v61 }
 0x4d5   : > { %v822_v21 = vpack.c.bf16 %v818_v20, %v818_v20 }
 0x4d7   : > { %1597 = vmatmul.mubr.msk.bf16.vlgmr.msra.gmra.mrb[4].mxu1 %vm584_vm3, %v822_v21 }
 0x4d8   : > { %1608 = vmatprep.mubr.msk.bf16.mxu1 %vm1870_vm2, %v1869_v9 }
 0x52c   : > { %v807_v22 = vpop.xlane.xlu0 %806 }
 0x52d   : > { %1761 = vrcp.f32 %v807_v22 }
 0x530   : > { %v810_v23 = vpop.xlane.xlu1 %809 }
 0x531   : > { %1763 = vrcp.f32 %v810_v23  ;;  %v1741_v23 = vld [vmem:[%s2047_s21] sm:$0xff]  }
 0x534   : > { %v924_v24 = vpop.permute.xlu1 %923  ;;  %v813_v26 = vpop.xlane.xlu0 %812 }
 0x535   : > { %v929_v27 = vsel %vm831_vm4, %v924_v24, 0  ;;  %1765 = vrcp.f32 %v813_v26  ;;  %v1742_v24 = vld [vmem:[%s2047_s21 + $0x8] sm:$0xff]   ;;  %v1743_v26 = vld [vmem:[%s2047_s21 + $0x10] sm:$0xff]  }
 0x536   : > { %1607 = vmatpush3.bf16.msra.mxu1 %v929_v27  ;;  %v1744_v27 = vld [vmem:[%s2047_s21 + $0x18] sm:$0xff]  }
 0x537   : > { %v1762_v25 = vpop.eup %1761  ;;  %1618 = vmatprep.subr.bf16.mxu1 %v1869_v9 }
 0x538   : > { %v819_v28 = vmul.f32 %v1762_v25, %v1754_v12  ;;  %v876_v29 = vpop.permute.xlu0 %875  ;;  %v972_v31 = vpop.permute.xlu1 %971  ;;  %v1745_v25 = vld [vmem:[%s2047_s21 + $0x20] sm:$0xff]  }
 0x539   : > { %v881_v30 = vsel %vm831_vm4, %v876_v29, 0  ;;  %v977_v35 = vsel %vm831_vm4, %v972_v31, 0  ;;  %v1747_v29 = vld [vmem:[%s2047_s21 + $0x30] sm:$0xff]   ;;  %v1506_v31 = vld [vmem:[%s467_s1] ss:$0 sm:$0xff] }
 0x53a   : > { %1601 = vmatpush3.bf16.msra.mxu0 %v881_v30  ;;  %v823_v32 = vpack.c.bf16 %v819_v28, %v819_v28  ;;  %v1746_v28 = vld [vmem:[%s2047_s21 + $0x28] sm:$0xff]   ;;  %v1748_v30 = vld [vmem:[%s2047_s21 + $0x38] sm:$0xff]  }
 0x53b   : > { %v1764_v33 = vpop.eup %1763  ;;  %1612 = vmatprep.subr.bf16.mxu0 %v1869_v9 }
 0x53c   : > { %v820_v34 = vmul.f32 %v1764_v33, %v1756_v14 }
 0x53d   : > { %1603 = vmatmul.mubr.msk.bf16.vlgmr.msra.gmra.mrb[16].mxu0 %vm584_vm3, %v823_v32 }
 0x53e   : > { %1613 = vmatpush3.bf16.msra.mxu0 %v977_v35  ;;  %v824_v36 = vpack.c.bf16 %v820_v34, %v820_v34  ;;  %1614 = vmatprep.mubr.msk.bf16.mxu0 %vm1870_vm2, %v1869_v9 }
 0x53f   : > { %v1766_v37 = vpop.eup %1765  ;;  %1626 = vmatprep.subr.bf16.mxu0 %v1869_v9 }
 0x540   : > { %v821_v38 = vmul.f32 %v1766_v37, %v1758_v16  ;;  %1609 = vmatmul.mubr.msk.bf16.vlgmr.msra.gmra.mrb[8].mxu1 %vm584_vm3, %v824_v36  ;;  %v1739_v16 = vld [vmem:[%s2033_s0] sm:$0xff]  }
 0x541   : > { %1622 = vmatprep.mubr.msk.bf16.mxu1 %vm1870_vm2, %v1869_v9  ;;  %1619 = vmatpush3.bf16.msra.mxu1 %v1737_v44 }
 0x542   : > { %v825_v39 = vpack.c.bf16 %v821_v38, %v821_v38  ;;  %1620 = vmatprep.subr.bf16.mxu1 %v1869_v9 }
 0x545   : > { %1615 = vmatmul.mubr.msk.bf16.vlgmr.msra.gmra.mrb[20].mxu0 %vm584_vm3, %v825_v39  ;;  %1621 = vmatpush3.bf16.msra.mxu1 %v1738_v45 }
 0x546   : > { %1630 = vmatprep.mubr.msk.bf16.mxu0 %vm1870_vm2, %v1869_v9  ;;  %1634 = vmatprep.subr.bf16.mxu1 %v1869_v9 }
 0x547   : > { %1627 = vmatpush3.bf16.msra.mxu0 %v1739_v16 }
 0x548   : > { %1628 = vmatprep.subr.bf16.mxu0 %v1869_v9 }
 0x5aa   : > { %v869_v40 = vpop.f32.mrb[4].mxu1 }
 0x5ab   : > { %v1598_v41 = vpop.f32.mrb[5].mxu1 }
 0x5ac   : > { %v872_v42 = vpop.f32.mrb[6].mxu1 }
 0x5ad   : > { %v1599_v43 = vpop.f32.mrb[7].mxu1 }
 0x5ae   : > { %v1511_v43 = vld [vmem:[%s475_s30] ss:$0 sm:$0xff]  ;;  %s1773_s30 = scalar_lea.vmem %s2202_s22, 128 }
 0x5af   : > { %p1774_p1 = scmp.ne.s32.totalorder %s2202_s22, %s1773_s30  ;;  %p1781_p6 = scmp.lt.s32.totalorder %s1779_s28, %s1773_s30 }
 0x5b1   : > { %p1775_p2 = pnand %p1774_p1, %p1979_p3  ;;  %p1782_p7 = por %p1781_p6, %p1780_p5 }
 0x5b3   : > { %p1776_p4 = pneg %p1775_p2 }
 0x5b5   : > { %p1783_p8 = pnand %p1782_p7, %p1776_p4 }
 0x610   : > { %v917_v46 = vpop.f32.mrb[16].mxu0 }
 0x611   : > { %1020 = vrot.lane.b32.xlu0 %v917_v46, %s1876_s17  ;;  %v1604_v47 = vpop.f32.mrb[17].mxu0 }
 0x612   : > { %v920_v48 = vpop.f32.mrb[18].mxu0 }
 0x613   : > { %v1605_v49 = vpop.f32.mrb[19].mxu0  ;;  %v965_v50 = vpop.f32.mrb[8].mxu1 }
 0x614   : > { %1024 = vrot.lane.b32.xlu1 %v965_v50, %s1877_s23  ;;  %v1610_v51 = vpop.f32.mrb[9].mxu1 }
 0x615   : > { %v968_v52 = vpop.f32.mrb[10].mxu1 }
 0x616   : > { %v1611_v53 = vpop.f32.mrb[11].mxu1 }
 0x618   : > { %v1013_v54 = vpop.f32.mrb[20].mxu0 }
 0x619   : > { %1028 = vrot.lane.b32.xlu0 %v1013_v54, %s1878_s15  ;;  %v1616_v55 = vpop.f32.mrb[21].mxu0 }
 0x61a   : > { %v1016_v56 = vpop.f32.mrb[22].mxu0 }
 0x61b   : > { %v1617_v57 = vpop.f32.mrb[23].mxu0 }
 0x683   : > { %v1021_v58 = vpop.permute.xlu0 %1020 }
 0x684   : > { %v1031_v60 = vsel %vm584_vm3, %v869_v40, %v1021_v58 }
 0x686   : > { %v1025_v59 = vpop.permute.xlu1 %1024 }
 0x687   : > { %v1033_v61 = vsel %vm1032_vm5, %v1031_v60, %v1025_v59 }
 0x68b   : > { %v1029_v62 = vpop.permute.xlu0 %1028 }
 0x68c   : > { %v1035_v63 = vsel %vm1034_vm6, %v1033_v61, %v1029_v62 }
 0x68d   : > { %v1036_v0 = vpack.c.bf16 %v1035_v63, %v1035_v63 }
 0x68f   : > { %1623 = vmatmul.mubr.msk.bf16.vlgmr.msra.gmra.mrb[12].mxu1 %vm485_vm1, %v1036_v0 }
 0x690   : > { %1650 = vmatprep.mubr.msk.bf16.mxu1 %vm1870_vm2, %v1869_v9  ;;  %1635 = vmatpush3.bf16.msra.mxu1 %v1741_v23 }
 0x691   : > { %1636 = vmatprep.subr.bf16.mxu1 %v1869_v9 }
 0x694   : > { %1637 = vmatpush3.bf16.msra.mxu1 %v1742_v24 }
 0x695   : > { %1638 = vmatprep.subr.bf16.mxu1 %v1869_v9 }
 0x698   : > { %1639 = vmatpush3.bf16.msra.mxu1 %v1743_v26 }
 0x699   : > { %1640 = vmatprep.subr.bf16.mxu1 %v1869_v9 }
 0x69c   : > { %1641 = vmatpush3.bf16.msra.mxu1 %v1744_v27 }
 0x69d   : > { %1642 = vmatprep.subr.bf16.mxu1 %v1869_v9 }
 0x6a0   : > { %1643 = vmatpush3.bf16.msra.mxu1 %v1745_v25 }
 0x6a1   : > { %1644 = vmatprep.subr.bf16.mxu1 %v1869_v9 }
 0x6a4   : > { %1645 = vmatpush3.bf16.msra.mxu1 %v1746_v28 }
 0x6a5   : > { %1646 = vmatprep.subr.bf16.mxu1 %v1869_v9 }
 0x6a8   : > { %1647 = vmatpush3.bf16.msra.mxu1 %v1747_v29 }
 0x6a9   : > { %1648 = vmatprep.subr.bf16.mxu1 %v1869_v9 }
 0x6ac   : > { %1649 = vmatpush3.bf16.msra.mxu1 %v1748_v30 }
 0x762   : > { %v1097_v3 = vpop.f32.mrb[12].mxu1 }
 0x763   : > { %v1098_v4 = vadd.f32 %v1502_v2, %v1097_v3  ;;  %v1624_v5 = vpop.f32.mrb[13].mxu1 }
 0x764   : > { %v1100_v6 = vpop.f32.mrb[14].mxu1 }
 0x765   : > { %v2159_v7 = vadd.f32 %v1098_v4, %v2054_v1  ;;  %v1625_v8 = vpop.f32.mrb[15].mxu1  ;;  %v1740_v1 = vld [vmem:[%s2033_s0 + $0x8] sm:$0xff]  }
 0x766   : > { %1629 = vmatpush3.bf16.msra.mxu0 %v1740_v1 }
 0x767   : > { %v1104_v10 = vsel %vm485_vm1, %v2159_v7, 0.0 }
 0x768   : > { %1105 = vadd.xlane.f32.xlu1 %v1104_v10 }
 0x7f5   : > { %v1106_v11 = vpop.xlane.xlu1 %1105 }
 0x7f6   : > { %v1107_v12 = vmul.f32 0.03125, %v1106_v11 }
 0x7f8   : > { %v1108_v13 = vsub.f32 %v2159_v7, %v1107_v12 }
 0x7fa   : > { %v1109_v14 = vmul.f32 %v1108_v13, %v1108_v13 }
 0x7fc   : > { %v1110_v15 = vsel %vm485_vm1, %v1109_v14, 0.0 }
 0x7fd   : > { %1111 = vadd.xlane.f32.xlu0 %v1110_v15 }
 0x88a   : > { %v1112_v17 = vpop.xlane.xlu0 %1111 }
 0x88b   : > { %v1113_v18 = vmul.f32 0.03125, %v1112_v17 }
 0x88d   : > { %v1114_v19 = vadd.f32 1e-05, %v1113_v18 }
 0x88f   : > { %1767 = vrsqrt.f32 %v1114_v19 }
 0x899   : > { %v1768_v20 = vpop.eup %1767 }
 0x89a   : > { %v1116_v21 = vmul.f32 %v1768_v20, %v1108_v13 }
 0x89c   : > { %v1117_v22 = vpack.c.bf16 %v1116_v21, %v1116_v21 }
 0x89e   : > { %1631 = vmatmul.mubr.msk.bf16.vlgmr.msra.gmra.mrb[24].mxu0 %vm485_vm1, %v1117_v22 }
 0x971   : > { %v1178_v32 = vpop.f32.mrb[24].mxu0 }
 0x972   : > { %v1179_v33 = vadd.f32 %v1506_v31, %v1178_v32  ;;  %v1632_v34 = vpop.f32.mrb[25].mxu0 }
 0x973   : > { %v1181_v35 = vpop.f32.mrb[26].mxu0 }
 0x974   : > { %v1510_v36 = vmul.f32 -1.702, %v1179_v33  ;;  %v1633_v37 = vpop.f32.mrb[27].mxu0 }
 0x976   : > { %v1186_v38 = vmul.f32 1.442695, %v1510_v36 }
 0x978   : > { %1769 = vpow2.f32 %v1186_v38 }
 0x982   : > { %v1770_v39 = vpop.eup %1769 }
 0x983   : > { %v1188_v9 = vadd.f32 1.0, %v1770_v39 }
 0x985   : > { %1771 = vrcp.f32 %v1188_v9 }
 0x98f   : > { %v1772_v40 = vpop.eup %1771 }
 0x990   : > { %v1191_v41 = vmul.f32 %v1772_v40, %v1179_v33 }
 0x992   : > { %v1192_v42 = vpack.c.bf16 %v1191_v41, %v1191_v41 }
 0x994   : > { %1651 = vmatmul.mubr.bf16.vlgmr.msra.gmra.mrb[16].mxu1 %v1192_v42 }
 0xa67   : > { %v1298_v44 = vpop.f32.mrb[16].mxu1 }
 0xa68   : > { %v1299_v45 = vadd.f32 %v1511_v43, %v1298_v44  ;;  %v1652_v46 = vpop.f32.mrb[17].mxu1 }
 0xa69   : > { %v1301_v47 = vpop.f32.mrb[18].mxu1 }
 0xa6a   : > { %v1304_v48 = vadd.f32 %v1299_v45, %v2159_v7  ;;  %v1653_v49 = vpop.f32.mrb[19].mxu1 }
 0xa6c   : > { %1305 = vst.msk [vmem:[%s2049_s9] sm:$0xff] %vm485_vm1, %v1304_v48 }
 0xa6d   : > { %1786 = shalt.err (!%p1783_p8)
}
 0xa6e   : > { %s1787_s9 = scalar_lea.hbm %s2200_s26, 128  ;;  %s1791_s15 = scalar_lea.hbm %s2301_s20, 256 }
 0xa6f   : > { %p1788_p10 = scmp.ne.s32.totalorder %s2200_s26, %s1787_s9  ;;  %p1792_p13 = scmp.lt.u32.totalorder %s2200_s26, %s2301_s20 }
 0xa70   : > { %p1793_p0 = scmp.lt.u32.totalorder %s1791_s15, %s1787_s9  ;;  %p1795_p2 = scmp.lt.u32.totalorder %s1787_s9, %s2200_s26 }
 0xa71   : > { %p1789_p11 = pnand %p1788_p10, %p1979_p3 }
 0xa72   : > { %p1794_p1 = por %p1793_p0, %p1792_p13 }
 0xa73   : > { %p1790_p12 = pneg %p1789_p11 }
 0xa74   : > { %p1796_p4 = por %p1795_p2, %p1794_p1 }
 0xa76   : > { %p1797_p5 = pnand %p1796_p4, %p1790_p12 }
 0xa78   : > { %1800 = shalt.err (!%p1797_p5)
}
 0xa79   : > { %1654 = dma.vmem_to_hbm [thread:$0]  (%p1979_p3), %s2202_s22, 128, %s2200_s26, %s1307_s29  }
 0xa7a PF: > { %s2303_s0 = sld [smem:[#allocation9_spill]]  ;;  %s2304_s18 = sld [smem:[#allocation5_spill]] }
 0xa80   : > { %p1660_p6 = scmp.ge.s32.totalorder %s2303_s0, 2  ;;  %s1332_s21 = sand.u32 1, %s2304_s18  }
 0xa81   : > { %s1333_s25 = scalar_lea.sflag [#allocation3], %s1332_s21 }
 0xa82   : > { %p1657_p7 = pnand %p1660_p6, %p1989_p9 }
 0xa84   : > { %1834 = dma.done.wait (!%p1657_p7), %s1333_s25, 128  }
 0xa85   : > { %1836 = vsyncadd (!%p1657_p7), %s1333_s25, 4294967168  ;;  %s22_s16 = sadd.s32 1, %s2303_s0   ;;  %s2306_s3 = sld [smem:[#allocation6_spill]] }
 0xa86   : > { %p19_p8 = scmp.ge.s32.totalorder %s22_s16, 6   ;;  %s2307_s11 = sld [smem:[#allocation14_spill]] }
 0xa87   : > { %s2308_s12 = sld [smem:[#allocation7_spill]]  ;;  %s2309_s13 = sld [smem:[#allocation8_spill]] }
 0xa88   : > { %s2310_s14 = sld [smem:[#allocation10_spill]]  ;;  %s2311_s15 = sld [smem:[#allocation12_spill]] }
 0xa89   : > { %s2312_s30 = smov %s1843_s10  ;;  %21 = sbr.rel (!%p19_p8) target bundleno = 10 (0xa), region = 119 }
 0xa8b   : > { %s2313_s10 = smov %s2306_s3 }
 0xa90   :  { %1338 = vsyncpa [#allocation3], 1 }
 0xa91   :  { %1340 = vsyncpa [#allocation3 + $0x1], 1 }

</bundles_post_ra>
